<compile_context>
chip_gen: v6e
topology: v6e:2x2x1
jax: 0.10.0
libtpu: 0.0.40
codegen_flags: <defaults>
</compile_context>

<pallas_src>
import functools

import jax
import jax.numpy as jnp
from jax.experimental import pallas as pl
from jax.experimental.pallas import tpu as pltpu


def _round_up(x, m):
    return (x + m - 1) // m * m


def _pad2(a, rows, cols, dtype=None):
    """Zero-pad a 2-D array to (rows, cols), optionally casting."""
    a = jnp.asarray(a)
    out = jnp.zeros((rows, cols), a.dtype).at[: a.shape[0], : a.shape[1]].set(a)
    if dtype is not None:
        out = out.astype(dtype)
    return out


# --------------------------------------------------------------------------- #
# Kernels
# --------------------------------------------------------------------------- #
def _generator_kernel(z_ref,
                      w1_ref, g1_ref, be1_ref,
                      w2_ref, g2_ref, be2_ref,
                      w3_ref, b3_ref,
                      out_ref, *, noise_dim, label_lane):
    """Single-block forward (whole batch resident in VMEM)."""
    eps = jnp.float32(1e-5)

    # Fused one_hot + concat: the float label sits in a padding lane (zero w1
    # row); rebuild the indicator with an iota compare and add it in place.
    z = z_ref[...]                                               # (B, in_pad) f32
    lane = jax.lax.broadcasted_iota(jnp.int32, z.shape, 1)
    lab = z[:, label_lane:label_lane + 1].astype(jnp.int32)      # (B, 1)
    onehot = (lane == lab + noise_dim).astype(z.dtype)
    x = (z + onehot).astype(jnp.bfloat16)                        # bf16 MXU operand

    # Layer 1: Linear (bias cancels under BN) -> BatchNorm1d -> ReLU
    h = jnp.dot(x, w1_ref[...], preferred_element_type=jnp.float32)
    mean = jnp.mean(h, axis=0, keepdims=True)
    c = h - mean
    var = jnp.mean(c * c, axis=0, keepdims=True)
    h = jnp.maximum(c * (jax.lax.rsqrt(var + eps) * g1_ref[...]) + be1_ref[...], 0.0)

    # Layer 2: Linear -> BatchNorm1d -> ReLU
    h = jnp.dot(h.astype(jnp.bfloat16), w2_ref[...],
                preferred_element_type=jnp.float32)
    mean = jnp.mean(h, axis=0, keepdims=True)
    c = h - mean
    var = jnp.mean(c * c, axis=0, keepdims=True)
    h = jnp.maximum(c * (jax.lax.rsqrt(var + eps) * g2_ref[...]) + be2_ref[...], 0.0)

    # Layer 3: Linear -> Tanh (tanh goes to the otherwise-idle EUP slot)
    o = jnp.dot(h.astype(jnp.bfloat16), w3_ref[...],
                preferred_element_type=jnp.float32) + b3_ref[...]
    out_ref[...] = jnp.tanh(o).astype(out_ref.dtype)


def _generator_tiled_kernel(z_ref,
                            w1_ref, g1_ref, be1_ref,
                            w2_ref, g2_ref, be2_ref,
                            w3_ref, b3_ref,
                            out_ref,
                            s1_ref, q1_ref, s2_ref, q2_ref,
                            *, noise_dim, label_lane, inv_batch):
    """Batch-tiled forward with a two-phase global BatchNorm reduction.

    grid = (3, num_tiles):
      phase 0: accumulate layer-1 pre-activation sum / sum-of-squares
      phase 1: recompute layer 1, normalize, accumulate layer-2 stats
      phase 2: recompute layers 1-2, normalize, layer 3 + tanh, store output
    Recompute (3x the matmul FLOPs) beats spilling (B, 128) activations to HBM.
    """
    eps = jnp.float32(1e-5)
    inv_b = jnp.float32(inv_batch)
    phase = pl.program_id(0)
    tile = pl.program_id(1)

    @pl.when((phase == 0) & (tile == 0))
    def _():
        s1_ref[...] = jnp.zeros_like(s1_ref)
        q1_ref[...] = jnp.zeros_like(q1_ref)
        s2_ref[...] = jnp.zeros_like(s2_ref)
        q2_ref[...] = jnp.zeros_like(q2_ref)

    z = z_ref[...]                                               # (TB, in_pad) f32
    lane = jax.lax.broadcasted_iota(jnp.int32, z.shape, 1)
    lab = z[:, label_lane:label_lane + 1].astype(jnp.int32)
    onehot = (lane == lab + noise_dim).astype(z.dtype)
    x = (z + onehot).astype(jnp.bfloat16)

    h1 = jnp.dot(x, w1_ref[...], preferred_element_type=jnp.float32)

    @pl.when(phase == 0)
    def _():
        s1_ref[...] += jnp.sum(h1, axis=0, keepdims=True)
        q1_ref[...] += jnp.sum(h1 * h1, axis=0, keepdims=True)

    @pl.when(phase >= 1)
    def _():
        mean1 = s1_ref[...] * inv_b
        var1 = q1_ref[...] * inv_b - mean1 * mean1
        h1n = jnp.maximum((h1 - mean1) * (jax.lax.rsqrt(var1 + eps) * g1_ref[...])
                          + be1_ref[...], 0.0)
        h2 = jnp.dot(h1n.astype(jnp.bfloat16), w2_ref[...],
                     preferred_element_type=jnp.float32)

        @pl.when(phase == 1)
        def _():
            s2_ref[...] += jnp.sum(h2, axis=0, keepdims=True)
            q2_ref[...] += jnp.sum(h2 * h2, axis=0, keepdims=True)

        @pl.when(phase == 2)
        def _():
            mean2 = s2_ref[...] * inv_b
            var2 = q2_ref[...] * inv_b - mean2 * mean2
            h2n = jnp.maximum((h2 - mean2) * (jax.lax.rsqrt(var2 + eps) * g2_ref[...])
                              + be2_ref[...], 0.0)
            o = jnp.dot(h2n.astype(jnp.bfloat16), w3_ref[...],
                        preferred_element_type=jnp.float32) + b3_ref[...]
            out_ref[...] = jnp.tanh(o).astype(out_ref.dtype)


# --------------------------------------------------------------------------- #
# Parameter padding & wrapper
# --------------------------------------------------------------------------- #
def pad_params(params, noise_dim, num_classes):
    """One-time padding/casting of parameters to lane-dense, MXU-friendly shapes.

    b1/b2 are dropped: a Linear bias feeding BatchNorm cancels exactly in the
    centering step.  Padding rows/cols/gammas/betas are zero so padding lanes
    stay exactly zero end-to-end.
    """
    (w1, _b1, g1, be1, w2, _b2, g2, be2, w3, b3) = params
    input_dim = noise_dim + num_classes
    hidden_dim = w1.shape[1]
    data_dim = w3.shape[1]

    in_pad = _round_up(input_dim + 1, 128)   # +1 reserves a padding lane for the label
    h_pad = _round_up(hidden_dim, 128)
    d_pad = _round_up(data_dim, 128)

    return (
        _pad2(w1, in_pad, h_pad, jnp.bfloat16),
        _pad2(g1, 1, h_pad), _pad2(be1, 1, h_pad),
        _pad2(w2, h_pad, h_pad, jnp.bfloat16),
        _pad2(g2, 1, h_pad), _pad2(be2, 1, h_pad),
        _pad2(w3, h_pad, d_pad, jnp.bfloat16),
        _pad2(b3, 1, d_pad),
    )


def conditional_generator_forward(z, labels, padded_params, noise_dim, data_dim,
                                  tile_batch=512, slice_output=True):
    """one_hot + concat + (Linear/BN/ReLU)x2 + Linear/Tanh as one pallas_call.

    Small batches use a single-block kernel; large batches (batch % tile_batch
    == 0 and >= 2 tiles) use the batch-tiled two-phase-BN grid.  Set
    slice_output=False to hand the lane-padded (B, d_pad) slab straight to a
    consumer kernel and skip the extra XLA slice op.
    """
    batch = z.shape[0]
    noise = z.shape[1]
    w1p = padded_params[0]
    w3p = padded_params[6]
    in_pad, h_pad = w1p.shape
    d_pad = w3p.shape[1]
    label_lane = in_pad - 1

    # Fold noise + float(label) into one lane-dense operand; the label lane hits
    # a zero weight row, so it never affects the matmul.
    z_p = jnp.zeros((batch, in_pad), jnp.float32)
    z_p = z_p.at[:, :noise].set(z.astype(jnp.float32))
    z_p = z_p.at[:, label_lane].set(labels.astype(jnp.float32))

    operands = (z_p, *padded_params)
    param_bytes = sum(int(a.size) * a.dtype.itemsize for a in padded_params)

    use_tiled = (tile_batch % 8 == 0 and batch % tile_batch == 0
                 and batch // tile_batch >= 2)

    if not use_tiled:
        flops = 2 * batch * (in_pad * h_pad + h_pad * h_pad + h_pad * d_pad)
        bytes_accessed = batch * (in_pad + d_pad) * 4 + param_bytes
        est = bytes_accessed + 6 * batch * h_pad * 4
        vmem_limit = int(min(max(2 * est, 8 * 2**20), 100 * 2**20))

        vmem_spec = pl.BlockSpec(memory_space=pltpu.MemorySpace.VMEM)
        kernel = functools.partial(_generator_kernel, noise_dim=noise_dim,
                                   label_lane=label_lane)
        out_padded = pl.pallas_call(
            kernel,
            out_shape=jax.ShapeDtypeStruct((batch, d_pad), jnp.float32),
            in_specs=[vmem_spec] * len(operands),
            out_specs=vmem_spec,
            cost_estimate=pl.CostEstimate(flops=flops,
                                          transcendentals=batch * d_pad + 2 * h_pad,
                                          bytes_accessed=bytes_accessed),
            compiler_params=pltpu.CompilerParams(vmem_limit_bytes=vmem_limit),
        )(*operands)
    else:
        num_tiles = batch // tile_batch
        kernel = functools.partial(_generator_tiled_kernel, noise_dim=noise_dim,
                                   label_lane=label_lane, inv_batch=1.0 / batch)

        const2 = lambda p, t: (0, 0)                   # weights stay VMEM-resident
        in_specs = [
            pl.BlockSpec((tile_batch, in_pad), lambda p, t: (t, 0)),   # z
            pl.BlockSpec((in_pad, h_pad), const2),                     # w1
            pl.BlockSpec((1, h_pad), const2),                          # g1
            pl.BlockSpec((1, h_pad), const2),                          # be1
            pl.BlockSpec((h_pad, h_pad), const2),                      # w2
            pl.BlockSpec((1, h_pad), const2),                          # g2
            pl.BlockSpec((1, h_pad), const2),                          # be2
            pl.BlockSpec((h_pad, d_pad), const2),                      # w3
            pl.BlockSpec((1, d_pad), const2),                          # b3
        ]
        # Output block index only advances in phase 2 -> no writebacks of
        # untouched buffers during the stats phases.
        out_specs = pl.BlockSpec((tile_batch, d_pad),
                                 lambda p, t: ((p // 2) * t, 0))

        flops = 2 * batch * (3 * in_pad * h_pad + 2 * h_pad * h_pad + h_pad * d_pad)
        bytes_accessed = 3 * batch * in_pad * 4 + param_bytes + batch * d_pad * 4
        est = (2 * tile_batch * (in_pad + d_pad) * 4 + param_bytes
               + 6 * tile_batch * h_pad * 4)
        vmem_limit = int(min(max(2 * est, 8 * 2**20), 100 * 2**20))

        out_padded = pl.pallas_call(
            kernel,
            out_shape=jax.ShapeDtypeStruct((batch, d_pad), jnp.float32),
            grid_spec=pltpu.PrefetchScalarGridSpec(
                num_scalar_prefetch=0,
                grid=(3, num_tiles),
                in_specs=in_specs,
                out_specs=out_specs,
                scratch_shapes=[pltpu.VMEM((1, h_pad), jnp.float32)] * 4),
            cost_estimate=pl.CostEstimate(flops=flops,
                                          transcendentals=batch * d_pad + 2 * h_pad,
                                          bytes_accessed=bytes_accessed),
            compiler_params=pltpu.CompilerParams(
                dimension_semantics=("arbitrary", "arbitrary"),
                vmem_limit_bytes=vmem_limit),
        )(*operands)

    if slice_output:
        return out_padded[:, :data_dim]
    return out_padded


# --------------------------------------------------------------------------- #
# Reference & parameter init (for standalone validation)
# --------------------------------------------------------------------------- #
def init_params(key, noise_dim, data_dim, num_classes, hidden_dim):
    input_dim = noise_dim + num_classes
    ks = jax.random.split(key, 6)
    w1 = jax.random.normal(ks[0], (input_dim, hidden_dim), jnp.float32) * 0.1
    b1 = jax.random.normal(ks[1], (1, hidden_dim), jnp.float32) * 0.1
    g1 = jnp.ones((1, hidden_dim), jnp.float32)
    be1 = jnp.zeros((1, hidden_dim), jnp.float32)
    w2 = jax.random.normal(ks[2], (hidden_dim, hidden_dim), jnp.float32) * 0.1
    b2 = jax.random.normal(ks[3], (1, hidden_dim), jnp.float32) * 0.1
    g2 = jnp.ones((1, hidden_dim), jnp.float32)
    be2 = jnp.zeros((1, hidden_dim), jnp.float32)
    w3 = jax.random.normal(ks[4], (hidden_dim, data_dim), jnp.float32) * 0.1
    b3 = jax.random.normal(ks[5], (1, data_dim), jnp.float32) * 0.1
    return (w1, b1, g1, be1, w2, b2, g2, be2, w3, b3)


def reference_forward(z, labels, params, noise_dim, num_classes):
    """Pure-JAX reference mirroring the PyTorch module (incl. Linear biases);
    matmul operands are bf16-rounded to mirror the kernel's MXU precision."""
    (w1, b1, g1, be1, w2, b2, g2, be2, w3, b3) = params
    cast = lambda a: a.astype(jnp.bfloat16)

    onehot = jax.nn.one_hot(labels, num_classes, dtype=jnp.float32)
    x = jnp.concatenate([z.astype(jnp.float32), onehot], axis=1)

    def bn_relu(h, g, be):
        mean = jnp.mean(h, axis=0, keepdims=True)
        c = h - mean
        var = jnp.mean(c * c, axis=0, keepdims=True)
        return jnp.maximum(c * jax.lax.rsqrt(var + 1e-5) * g + be, 0.0)

    h = jnp.dot(cast(x), cast(w1), preferred_element_type=jnp.float32) + b1
    h = bn_relu(h, g1, be1)
    h = jnp.dot(cast(h), cast(w2), preferred_element_type=jnp.float32) + b2
    h = bn_relu(h, g2, be2)
    o = jnp.dot(cast(h), cast(w3), preferred_element_type=jnp.float32) + b3
    return jnp.tanh(o)


if __name__ == "__main__":
    noise_dim = 16
    data_dim = 8
    num_classes = 4
    hidden_dim = 32

    key = jax.random.PRNGKey(0)
    k_p, k_z1, k_l1, k_z2, k_l2 = jax.random.split(key, 5)
    params = init_params(k_p, noise_dim, data_dim, num_classes, hidden_dim)
    padded = pad_params(params, noise_dim, num_classes)   # one-time, off hot path

    fwd = jax.jit(conditional_generator_forward, static_argnums=(3, 4, 5, 6))

    # --- small batch: single-block kernel ---
    b_small = 8
    z1 = jax.random.normal(k_z1, (b_small, noise_dim), jnp.float32)
    l1 = jax.random.randint(k_l1, (b_small,), 0, num_classes, dtype=jnp.int32)
    out1 = jax.block_until_ready(fwd(z1, l1, padded, noise_dim, data_dim, 512, True))
    ref1 = reference_forward(z1, l1, params, noise_dim, num_classes)
    assert out1.shape == (b_small, data_dim)
    assert bool(jnp.all(jnp.isfinite(out1)))
    assert bool(jnp.all(jnp.abs(out1) <= 1.0))
    assert float(jnp.max(jnp.abs(out1 - ref1))) < 2e-2

    # --- larger batch: batch-tiled grid with two-phase BatchNorm reduction ---
    b_big, tb = 64, 32
    z2 = jax.random.normal(k_z2, (b_big, noise_dim), jnp.float32)
    l2 = jax.random.randint(k_l2, (b_big,), 0, num_classes, dtype=jnp.int32)
    out2 = jax.block_until_ready(fwd(z2, l2, padded, noise_dim, data_dim, tb, True))
    ref2 = reference_forward(z2, l2, params, noise_dim, num_classes)
    assert out2.shape == (b_big, data_dim)
    assert bool(jnp.all(jnp.isfinite(out2)))
    assert float(jnp.max(jnp.abs(out2 - ref2))) < 2e-2

    print("KERNEL_OK")
</pallas_src>

<mosaic_0001>
module attributes {stable_mosaic.version = 11 : i64} {
  func.func @_generator_kernel(%arg0: memref<8x128xf32, #tpu.memory_space<vmem>>, %arg1: memref<128x128xbf16, #tpu.memory_space<vmem>>, %arg2: memref<1x128xf32, #tpu.memory_space<vmem>>, %arg3: memref<1x128xf32, #tpu.memory_space<vmem>>, %arg4: memref<128x128xbf16, #tpu.memory_space<vmem>>, %arg5: memref<1x128xf32, #tpu.memory_space<vmem>>, %arg6: memref<1x128xf32, #tpu.memory_space<vmem>>, %arg7: memref<128x128xbf16, #tpu.memory_space<vmem>>, %arg8: memref<1x128xf32, #tpu.memory_space<vmem>>, %arg9: memref<8x128xf32, #tpu.memory_space<vmem>>) attributes {dimension_semantics = [], scalar_prefetch = 0 : i64, scratch_operands = 0 : i64, tpu.core_type = #tpu.core_type<tc>} {
    %c0 = arith.constant 0 : index
    %c0_0 = arith.constant 0 : index
    %0 = vector.load %arg0[%c0, %c0_0] : memref<8x128xf32, #tpu.memory_space<vmem>>, vector<8x128xf32>
    %1 = tpu.iota {dimensions = array<i32: 1>} : vector<8x128xi32>
    %2 = vector.extract_strided_slice %0 {offsets = [0, 127], sizes = [8, 1], strides = [1, 1]} : vector<8x128xf32> to vector<8x1xf32>
    %3 = arith.fptosi %2 : vector<8x1xf32> to vector<8x1xi32>
    %c16_i32 = arith.constant 16 : i32
    %4 = vector.broadcast %c16_i32 : i32 to vector<8x1xi32>
    %5 = arith.addi %3, %4 : vector<8x1xi32>
    %6 = vector.broadcast %5 : vector<8x1xi32> to vector<8x128xi32>
    %7 = arith.cmpi eq, %1, %6 : vector<8x128xi32>
    %8 = arith.extui %7 : vector<8x128xi1> to vector<8x128xi32>
    %9 = arith.sitofp %8 : vector<8x128xi32> to vector<8x128xf32>
    %10 = arith.addf %0, %9 : vector<8x128xf32>
    %11 = arith.truncf %10 : vector<8x128xf32> to vector<8x128xbf16>
    %c0_1 = arith.constant 0 : index
    %c0_2 = arith.constant 0 : index
    %12 = vector.load %arg1[%c0_1, %c0_2] : memref<128x128xbf16, #tpu.memory_space<vmem>>, vector<128x128xbf16>
    %cst = arith.constant dense<0.000000e+00> : vector<8x128xf32>
    %13 = tpu.matmul %11, %12, %cst {dimension_numbers = #tpu.dot_dimension_numbers<[1], [0], [0], [1], [0, 0, 1, 1], [], []>} : vector<8x128xbf16>, vector<128x128xbf16>, vector<8x128xf32> -> vector<8x128xf32>
    %cst_3 = arith.constant dense<0.000000e+00> : vector<128xf32>
    %14 = vector.multi_reduction <add>, %13, %cst_3 [0] : vector<8x128xf32> to vector<128xf32>
    %15 = vector.shape_cast %14 : vector<128xf32> to vector<1x128xf32>
    %cst_4 = arith.constant 8.000000e+00 : f32
    %16 = vector.broadcast %cst_4 : f32 to vector<1x128xf32>
    %17 = arith.divf %15, %16 : vector<1x128xf32>
    %18 = vector.broadcast %17 : vector<1x128xf32> to vector<8x128xf32>
    %19 = arith.subf %13, %18 : vector<8x128xf32>
    %20 = arith.mulf %19, %19 : vector<8x128xf32>
    %cst_5 = arith.constant dense<0.000000e+00> : vector<128xf32>
    %21 = vector.multi_reduction <add>, %20, %cst_5 [0] : vector<8x128xf32> to vector<128xf32>
    %22 = vector.shape_cast %21 : vector<128xf32> to vector<1x128xf32>
    %cst_6 = arith.constant 8.000000e+00 : f32
    %23 = vector.broadcast %cst_6 : f32 to vector<1x128xf32>
    %24 = arith.divf %22, %23 : vector<1x128xf32>
    %cst_7 = arith.constant 9.99999974E-6 : f32
    %25 = vector.broadcast %cst_7 : f32 to vector<1x128xf32>
    %26 = arith.addf %24, %25 : vector<1x128xf32>
    %27 = math.rsqrt %26 : vector<1x128xf32>
    %c0_8 = arith.constant 0 : index
    %c0_9 = arith.constant 0 : index
    %28 = vector.load %arg2[%c0_8, %c0_9] : memref<1x128xf32, #tpu.memory_space<vmem>>, vector<1x128xf32>
    %29 = arith.mulf %27, %28 : vector<1x128xf32>
    %30 = vector.broadcast %29 : vector<1x128xf32> to vector<8x128xf32>
    %31 = arith.mulf %19, %30 : vector<8x128xf32>
    %c0_10 = arith.constant 0 : index
    %c0_11 = arith.constant 0 : index
    %32 = vector.load %arg3[%c0_10, %c0_11] : memref<1x128xf32, #tpu.memory_space<vmem>>, vector<1x128xf32>
    %33 = vector.broadcast %32 : vector<1x128xf32> to vector<8x128xf32>
    %34 = arith.addf %31, %33 : vector<8x128xf32>
    %cst_12 = arith.constant 0.000000e+00 : f32
    %35 = vector.broadcast %cst_12 : f32 to vector<8x128xf32>
    %36 = arith.maximumf %34, %35 : vector<8x128xf32>
    %37 = arith.truncf %36 : vector<8x128xf32> to vector<8x128xbf16>
    %c0_13 = arith.constant 0 : index
    %c0_14 = arith.constant 0 : index
    %38 = vector.load %arg4[%c0_13, %c0_14] : memref<128x128xbf16, #tpu.memory_space<vmem>>, vector<128x128xbf16>
    %cst_15 = arith.constant dense<0.000000e+00> : vector<8x128xf32>
    %39 = tpu.matmul %37, %38, %cst_15 {dimension_numbers = #tpu.dot_dimension_numbers<[1], [0], [0], [1], [0, 0, 1, 1], [], []>} : vector<8x128xbf16>, vector<128x128xbf16>, vector<8x128xf32> -> vector<8x128xf32>
    %cst_16 = arith.constant dense<0.000000e+00> : vector<128xf32>
    %40 = vector.multi_reduction <add>, %39, %cst_16 [0] : vector<8x128xf32> to vector<128xf32>
    %41 = vector.shape_cast %40 : vector<128xf32> to vector<1x128xf32>
    %cst_17 = arith.constant 8.000000e+00 : f32
    %42 = vector.broadcast %cst_17 : f32 to vector<1x128xf32>
    %43 = arith.divf %41, %42 : vector<1x128xf32>
    %44 = vector.broadcast %43 : vector<1x128xf32> to vector<8x128xf32>
    %45 = arith.subf %39, %44 : vector<8x128xf32>
    %46 = arith.mulf %45, %45 : vector<8x128xf32>
    %cst_18 = arith.constant dense<0.000000e+00> : vector<128xf32>
    %47 = vector.multi_reduction <add>, %46, %cst_18 [0] : vector<8x128xf32> to vector<128xf32>
    %48 = vector.shape_cast %47 : vector<128xf32> to vector<1x128xf32>
    %cst_19 = arith.constant 8.000000e+00 : f32
    %49 = vector.broadcast %cst_19 : f32 to vector<1x128xf32>
    %50 = arith.divf %48, %49 : vector<1x128xf32>
    %cst_20 = arith.constant 9.99999974E-6 : f32
    %51 = vector.broadcast %cst_20 : f32 to vector<1x128xf32>
    %52 = arith.addf %50, %51 : vector<1x128xf32>
    %53 = math.rsqrt %52 : vector<1x128xf32>
    %c0_21 = arith.constant 0 : index
    %c0_22 = arith.constant 0 : index
    %54 = vector.load %arg5[%c0_21, %c0_22] : memref<1x128xf32, #tpu.memory_space<vmem>>, vector<1x128xf32>
    %55 = arith.mulf %53, %54 : vector<1x128xf32>
    %56 = vector.broadcast %55 : vector<1x128xf32> to vector<8x128xf32>
    %57 = arith.mulf %45, %56 : vector<8x128xf32>
    %c0_23 = arith.constant 0 : index
    %c0_24 = arith.constant 0 : index
    %58 = vector.load %arg6[%c0_23, %c0_24] : memref<1x128xf32, #tpu.memory_space<vmem>>, vector<1x128xf32>
    %59 = vector.broadcast %58 : vector<1x128xf32> to vector<8x128xf32>
    %60 = arith.addf %57, %59 : vector<8x128xf32>
    %cst_25 = arith.constant 0.000000e+00 : f32
    %61 = vector.broadcast %cst_25 : f32 to vector<8x128xf32>
    %62 = arith.maximumf %60, %61 : vector<8x128xf32>
    %63 = arith.truncf %62 : vector<8x128xf32> to vector<8x128xbf16>
    %c0_26 = arith.constant 0 : index
    %c0_27 = arith.constant 0 : index
    %64 = vector.load %arg7[%c0_26, %c0_27] : memref<128x128xbf16, #tpu.memory_space<vmem>>, vector<128x128xbf16>
    %cst_28 = arith.constant dense<0.000000e+00> : vector<8x128xf32>
    %65 = tpu.matmul %63, %64, %cst_28 {dimension_numbers = #tpu.dot_dimension_numbers<[1], [0], [0], [1], [0, 0, 1, 1], [], []>} : vector<8x128xbf16>, vector<128x128xbf16>, vector<8x128xf32> -> vector<8x128xf32>
    %c0_29 = arith.constant 0 : index
    %c0_30 = arith.constant 0 : index
    %66 = vector.load %arg8[%c0_29, %c0_30] : memref<1x128xf32, #tpu.memory_space<vmem>>, vector<1x128xf32>
    %67 = vector.broadcast %66 : vector<1x128xf32> to vector<8x128xf32>
    %68 = arith.addf %65, %67 : vector<8x128xf32>
    %69 = math.tanh %68 : vector<8x128xf32>
    %c0_31 = arith.constant 0 : index
    %c0_32 = arith.constant 0 : index
    %70 = vector.load %arg9[%c0_31, %c0_32] : memref<8x128xf32, #tpu.memory_space<vmem>>, vector<8x128xf32>
    tpu.vector_store %arg9[%c0_31, %c0_32], %69 {strides = array<i32>} : memref<8x128xf32, #tpu.memory_space<vmem>>, vector<8x128xf32>,
    return
  }
}

</mosaic_0001>

<bundles_post_ra>
// kernel: conditional_generator_forward.1
= control target key start
LH: loop header
LB: loop body
LE: loop exit
PB: predicated region body
PF: predicated region fallthrough
CT: control target
= control target key end

     0   :  { %14 = vsyncpa [#allocation3], 0  ;;  %s845_s0 = inlined_call_operand.vmem [shape: f32[8,128], index: 0, kind: input, shape index: {}]   ;;  %s846_s1 = inlined_call_operand.vmem [shape: bf16[128,128], index: 1, kind: input, shape index: {}]   ;;  %s847_s2 = inlined_call_operand.vmem [shape: f32[1,128], index: 2, kind: input, shape index: {}]   ;;  %s848_s3 = inlined_call_operand.vmem [shape: f32[1,128], index: 3, kind: input, shape index: {}]   ;;  %s849_s4 = inlined_call_operand.hbm [shape: bf16[128,128], index: 4, kind: input, shape index: {}]   ;;  %s850_s5 = inlined_call_operand.vmem [shape: f32[1,128], index: 5, kind: input, shape index: {}]   ;;  %s851_s6 = inlined_call_operand.vmem [shape: f32[1,128], index: 6, kind: input, shape index: {}]   ;;  %s852_s7 = inlined_call_operand.hbm [shape: bf16[128,128], index: 7, kind: input, shape index: {}]   ;;  %s853_s8 = inlined_call_operand.vmem [shape: f32[1,128], index: 8, kind: input, shape index: {}]   ;;  %s854_s9 = inlined_call_operand.hbm [shape: f32[8,128], index: 9, kind: output, shape index: {}]  }
   0x1   :  { %15 = vsyncpa [#allocation6], 0 }
   0x2   :  { %16 = vsyncpa [#allocation4], 0  ;;  %s705_s30 = smov [#allocation2]  }
   0x3   :  { %s30_s10 = sshll.u32 %s705_s30, 4  ;;  %s31_s10 = int_to_ptr.vmem [resolvable:$true] %s30_s10 }
   0x4   :  { %s647_s11 = scalar_lea.vmem %s31_s10, 1024  ;;  %p652_p1 = scmp.lt.s32.totalorder %s31_s10, %s31_s10 }
   0x5   :  { %p648_p0 = scmp.ne.s32.totalorder %s31_s10, %s647_s11  ;;  %p653_p2 = scmp.lt.s32.totalorder %s647_s11, %s647_s11 }
   0x7   :  { %p654_p3 = por %p653_p2, %p652_p1 }
   0x9   :  { %p655_p4 = pnand %p654_p3, %p648_p0 }
   0xb   :  { %658 = shalt.err (!%p655_p4)
}
   0xc   :  { %s706_s12 = smov 64   ;;  %s707_s13 = smov 4  }
   0xd   :  { %36 = dma.hbm_to_vmem [thread:$0]  %s849_s4, 1024, %s31_s10, [#allocation3], %s706_s12, %s706_s12, %s707_s13  }
   0xe   :  { %s708_s16 = smov [#allocation5]  }
   0xf   :  { %s46_s17 = sshll.u32 %s708_s16, 4  ;;  %s47_s17 = int_to_ptr.vmem [resolvable:$true] %s46_s17 }
  0x10   :  { %s667_s18 = scalar_lea.vmem %s47_s17, 1024  ;;  %p672_p6 = scmp.lt.s32.totalorder %s47_s17, %s47_s17 }
  0x11   :  { %p668_p5 = scmp.ne.s32.totalorder %s47_s17, %s667_s18  ;;  %p673_p7 = scmp.lt.s32.totalorder %s667_s18, %s667_s18 }
  0x13   :  { %p674_p8 = por %p673_p7, %p672_p6 }
  0x15   :  { %p675_p9 = pnand %p674_p8, %p668_p5 }
  0x17   :  { %678 = shalt.err (!%p675_p9)
}
  0x18   :  { %52 = dma.hbm_to_vmem [thread:$0]  %s852_s7, 1024, %s47_s17, [#allocation6], %s706_s12, %s706_s12, %s707_s13  }
  0x19   :  { %699 = dma.done.wait [#allocation3], 1024  }
  0x1a   :  { %700 = vsyncadd [#allocation3], 4294966272 }
  0x1b   :  { %701 = dma.done.wait [#allocation6], 1024  }
  0x1c   :  { %702 = vsyncadd [#allocation6], 4294966272  ;;  %v709_v0 = vmov 127   ;;  %v710_v1 = vmov 0.0   ;;  %v62_v2 = vld [vmem:[%s845_s0] sm:$0xff]  ;;  %v609_v4 = vld [vmem:[%s846_s1 + $0x38] sm:$0xff]   ;;  %v63_v14 = vlaneseq }
  0x1d   :  { %608 = vset.pattern.permute.xlu0 %v709_v0  ;;  %538 = vmatprep.subr.bf16.mxu0 %v710_v1  ;;  %v598_v3 = vtrunc.f32 %v62_v2  ;;  %v610_v6 = vld [vmem:[%s846_s1 + $0x30] sm:$0xff]   ;;  %v611_v8 = vld [vmem:[%s846_s1 + $0x28] sm:$0xff]   ;;  %vm711_vm0 = vmmov 0   ;;  %v612_v9 = vld [vmem:[%s846_s1 + $0x20] sm:$0xff]  }
  0x1e   :  { %558 = vmatprep.subr.bf16.mxu1 %v710_v1  ;;  %539 = vmatpush3.bf16.msra.mxu0 %v609_v4  ;;  %v613_v10 = vld [vmem:[%s846_s1 + $0x18] sm:$0xff]   ;;  %v614_v11 = vld [vmem:[%s846_s1 + $0x10] sm:$0xff]   ;;  %v615_v12 = vld [vmem:[%s846_s1 + $0x8] sm:$0xff]   ;;  %v64_v15 = vand.u32 127, %v63_v14  ;;  %v201_v49 = vshrl.u32 %v63_v14, 7 }
  0x1f   :  { %v599_v5 = vcvt.f32.s32 %v598_v3  ;;  %540 = vmatprep.subr.bf16.mxu0 %v710_v1  ;;  %554 = vmatprep.mubr.msk.bf16.mxu0 %vm711_vm0, %v710_v1  ;;  %v616_v13 = vld [vmem:[%s846_s1] sm:$0xff]   ;;  %v617_v20 = vld [vmem:[#allocation2 + $0x38] sm:$0xff]   ;;  %v618_v21 = vld [vmem:[#allocation2 + $0x30] sm:$0xff]  }
  0x20   :  { %574 = vmatprep.mubr.msk.bf16.mxu1 %vm711_vm0, %v710_v1  ;;  %559 = vmatpush3.bf16.msra.mxu1 %v617_v20  ;;  %v619_v22 = vld [vmem:[#allocation2 + $0x28] sm:$0xff]   ;;  %v620_v23 = vld [vmem:[#allocation2 + $0x20] sm:$0xff]   ;;  %v621_v24 = vld [vmem:[#allocation2 + $0x18] sm:$0xff]   ;;  %v202_v51 = vsub.s32 0, %v201_v49 }
  0x21   :  { %v66_v7 = vadd.s32 16, %v599_v5  ;;  %560 = vmatprep.subr.bf16.mxu1 %v710_v1  ;;  %v622_v25 = vld [vmem:[#allocation2 + $0x10] sm:$0xff]   ;;  %v623_v26 = vld [vmem:[#allocation2 + $0x8] sm:$0xff]   ;;  %v624_v27 = vld [vmem:[#allocation2] sm:$0xff]  }
  0x22   :  { %541 = vmatpush3.bf16.msra.mxu0 %v610_v6  ;;  %v198_v50 = vld [vmem:[%s847_s2] sm:$0x1]  ;;  %v625_v60 = vld [vmem:[#allocation5 + $0x38] sm:$0xff]   ;;  %v626_v61 = vld [vmem:[#allocation5 + $0x30] sm:$0xff]  }
  0x23   :  { %68 = vperm.xlu0 %608, %v66_v7   ;;  %542 = vmatprep.subr.bf16.mxu0 %v710_v1  ;;  %v492_v55 = vld [vmem:[%s848_s3] ss:$0 sm:$0xff]  ;;  %v627_v62 = vld [vmem:[#allocation5 + $0x28] sm:$0xff]   ;;  %v629_v0 = vld [vmem:[#allocation5 + $0x18] sm:$0xff]  }
  0x24   :  { %561 = vmatpush3.bf16.msra.mxu1 %v618_v21  ;;  %v628_v63 = vld [vmem:[#allocation5 + $0x20] sm:$0xff]   ;;  %v631_v3 = vld [vmem:[#allocation5 + $0x8] sm:$0xff]  }
  0x25   :  { %562 = vmatprep.subr.bf16.mxu1 %v710_v1  ;;  %v632_v4 = vld [vmem:[#allocation5] sm:$0xff]  }
  0x26   :  { %543 = vmatpush3.bf16.msra.mxu0 %v611_v8 }
  0x27   :  { %544 = vmatprep.subr.bf16.mxu0 %v710_v1 }
  0x28   :  { %563 = vmatpush3.bf16.msra.mxu1 %v619_v22 }
  0x29   :  { %564 = vmatprep.subr.bf16.mxu1 %v710_v1 }
  0x2a   :  { %545 = vmatpush3.bf16.msra.mxu0 %v612_v9 }
  0x2b   :  { %546 = vmatprep.subr.bf16.mxu0 %v710_v1 }
  0x2c   :  { %565 = vmatpush3.bf16.msra.mxu1 %v620_v23 }
  0x2d   :  { %566 = vmatprep.subr.bf16.mxu1 %v710_v1 }
  0x2e   :  { %547 = vmatpush3.bf16.msra.mxu0 %v613_v10 }
  0x2f   :  { %548 = vmatprep.subr.bf16.mxu0 %v710_v1 }
  0x30   :  { %567 = vmatpush3.bf16.msra.mxu1 %v621_v24 }
  0x31   :  { %568 = vmatprep.subr.bf16.mxu1 %v710_v1 }
  0x32   :  { %549 = vmatpush3.bf16.msra.mxu0 %v614_v11 }
  0x33   :  { %550 = vmatprep.subr.bf16.mxu0 %v710_v1 }
  0x34   :  { %569 = vmatpush3.bf16.msra.mxu1 %v622_v25  ;;  %v337_v25 = vld [vmem:[%s850_s5] sm:$0x1]  ;;  %s712_s5 = smov [#allocation7]  }
  0x35   :  { %570 = vmatprep.subr.bf16.mxu1 %v710_v1  ;;  %s473_s21 = sshll.u32 %s712_s5, 4  ;;  %s474_s21 = int_to_ptr.vmem [resolvable:$true] %s473_s21 }
  0x36   :  { %551 = vmatpush3.bf16.msra.mxu0 %v615_v12  ;;  %p684_p11 = scmp.lt.s32.totalorder %s474_s21, %s474_s21 }
  0x37   :  { %552 = vmatprep.subr.bf16.mxu0 %v710_v1 }
  0x38   :  { %571 = vmatpush3.bf16.msra.mxu1 %v623_v26 }
  0x39   :  { %572 = vmatprep.subr.bf16.mxu1 %v710_v1 }
  0x3a   :  { %553 = vmatpush3.bf16.msra.mxu0 %v616_v13 }
  0x3b   :  { %578 = vmatprep.subr.bf16.mxu0 %v710_v1 }
  0x3c   :  { %573 = vmatpush3.bf16.msra.mxu1 %v624_v27 }
  0x9e   :  { %v69_v16 = vpop.permute.xlu0 %68 }
  0x9f   :  { %vm70_vm1 = vcmp.eq.s32.totalorder %v64_v15, %v69_v16 }
  0xa0   :  { %v483_v17 = vsel %vm70_vm1, 1.0, %v710_v1 }
  0xa1   :  { %v73_v18 = vadd.f32 %v483_v17, %v62_v2  ;;  %v630_v2 = vld [vmem:[#allocation5 + $0x10] sm:$0xff]  }
  0xa3   :  { %v74_v19 = vpack.c.bf16 %v73_v18, %v73_v18 }
  0xa5   :  { %555 = vmatmul.mubr.bf16.vlgmr.msra.gmra.mxu0 %v74_v19 }
  0xa6   :  { %594 = vmatprep.mubr.msk.bf16.mxu0 %vm711_vm0, %v710_v1  ;;  %579 = vmatpush3.bf16.msra.mxu0 %v625_v60 }
  0xa7   :  { %580 = vmatprep.subr.bf16.mxu0 %v710_v1 }
  0xaa   :  { %581 = vmatpush3.bf16.msra.mxu0 %v626_v61 }
  0xab   :  { %582 = vmatprep.subr.bf16.mxu0 %v710_v1 }
  0xae   :  { %583 = vmatpush3.bf16.msra.mxu0 %v627_v62 }
  0xaf   :  { %584 = vmatprep.subr.bf16.mxu0 %v710_v1 }
  0xb2   :  { %585 = vmatpush3.bf16.msra.mxu0 %v628_v63 }
  0xb3   :  { %586 = vmatprep.subr.bf16.mxu0 %v710_v1 }
  0xb6   :  { %587 = vmatpush3.bf16.msra.mxu0 %v629_v0 }
  0xb7   :  { %588 = vmatprep.subr.bf16.mxu0 %v710_v1 }
  0xba   :  { %589 = vmatpush3.bf16.msra.mxu0 %v630_v2 }
  0xbb   :  { %590 = vmatprep.subr.bf16.mxu0 %v710_v1 }
  0xbe   :  { %591 = vmatpush3.bf16.msra.mxu0 %v631_v3 }
  0xbf   :  { %592 = vmatprep.subr.bf16.mxu0 %v710_v1 }
  0xc2   :  { %593 = vmatpush3.bf16.msra.mxu0 %v632_v4 }
 0x165   :  { %v173_v28 = vpop.f32.mrf.mxu0 }
 0x166   :  { %v179_v29 = vrot.slane %v173_v28, 4 }
 0x167   :  { %v556_v30 = vpop.f32.mrf.mxu0 }
 0x168   :  { %v180_v31 = vadd.f32 %v179_v29, %v173_v28  ;;  %v501_v29 = vld [vmem:[%s851_s6] ss:$0 sm:$0xff]  ;;  %s679_s6 = scalar_lea.vmem %s474_s21, 128 }
 0x169   :  { %v176_v32 = vpop.f32.mrf.mxu0  ;;  %p680_p10 = scmp.ne.s32.totalorder %s474_s21, %s679_s6  ;;  %p685_p12 = scmp.lt.s32.totalorder %s679_s6, %s679_s6 }
 0x16a   :  { %v181_v33 = vrot.slane %v180_v31, 2 }
 0x16b   :  { %v557_v34 = vpop.f32.mrf.mxu0  ;;  %p686_p13 = por %p685_p12, %p684_p11 }
 0x16c   :  { %v182_v35 = vadd.f32 %v181_v33, %v180_v31  ;;  %v502_v34 = vld [vmem:[%s853_s8] ss:$0 sm:$0xff] }
 0x16d   :  { %p687_p0 = pnand %p686_p13, %p680_p10 }
 0x16e   :  { %v183_v36 = vrot.slane %v182_v35, 1 }
 0x170   :  { %v184_v37 = vadd.f32 %v183_v36, %v182_v35 }
 0x172   :  { %v186_v38 = vmul.f32 0.125, %v184_v37 }
 0x174   :  { %v187_v39 = vsub.f32 %v173_v28, %v186_v38 }
 0x176   :  { %v188_v40 = vmul.f32 %v187_v39, %v187_v39 }
 0x178   :  { %v189_v41 = vrot.slane %v188_v40, 4 }
 0x17a   :  { %v190_v42 = vadd.f32 %v189_v41, %v188_v40 }
 0x17c   :  { %v191_v43 = vrot.slane %v190_v42, 2 }
 0x17e   :  { %v192_v44 = vadd.f32 %v191_v43, %v190_v42 }
 0x180   :  { %v193_v45 = vrot.slane %v192_v44, 1 }
 0x182   :  { %v194_v46 = vadd.f32 %v193_v45, %v192_v44 }
 0x184   :  { %v195_v47 = vmul.f32 0.125, %v194_v46 }
 0x186   :  { %v196_v48 = vadd.f32 1e-05, %v195_v47 }
 0x188   :  { %633 = vrsqrt.f32 %v196_v48 }
 0x195   :  { %v634_v52 = vpop.eup %633 }
 0x196   :  { %v199_v53 = vmul.f32 %v634_v52, %v198_v50 }
 0x198   :  { %v203_v54 = vrot.slane %v199_v53, %v202_v51 }
 0x19a   :  { %v204_v56 = vmul.f32 %v203_v54, %v187_v39 }
 0x19c   :  { %v212_v57 = vadd.f32 %v492_v55, %v204_v56 }
 0x19e   :  { %v213_v58 = vmax.f32 %v212_v57, 0.0 }
 0x1a0   :  { %v214_v59 = vpack.c.bf16 %v213_v58, %v213_v58 }
 0x1a2   :  { %575 = vmatmul.mubr.bf16.vlgmr.msra.gmra.mxu1 %v214_v59 }
 0x262   :  { %v313_v5 = vpop.f32.mrf.mxu1 }
 0x263   :  { %v319_v6 = vrot.slane %v313_v5, 4 }
 0x264   :  { %v576_v7 = vpop.f32.mrf.mxu1 }
 0x265   :  { %v320_v8 = vadd.f32 %v319_v6, %v313_v5 }
 0x266   :  { %v316_v9 = vpop.f32.mrf.mxu1 }
 0x267   :  { %v321_v10 = vrot.slane %v320_v8, 2 }
 0x268   :  { %v577_v11 = vpop.f32.mrf.mxu1 }
 0x269   :  { %v322_v12 = vadd.f32 %v321_v10, %v320_v8 }
 0x26b   :  { %v323_v13 = vrot.slane %v322_v12, 1 }
 0x26d   :  { %v324_v14 = vadd.f32 %v323_v13, %v322_v12 }
 0x26f   :  { %v325_v15 = vmul.f32 0.125, %v324_v14 }
 0x271   :  { %v326_v16 = vsub.f32 %v313_v5, %v325_v15 }
 0x273   :  { %v327_v17 = vmul.f32 %v326_v16, %v326_v16 }
 0x275   :  { %v328_v18 = vrot.slane %v327_v17, 4 }
 0x277   :  { %v329_v19 = vadd.f32 %v328_v18, %v327_v17 }
 0x279   :  { %v330_v20 = vrot.slane %v329_v19, 2 }
 0x27b   :  { %v331_v21 = vadd.f32 %v330_v20, %v329_v19 }
 0x27d   :  { %v332_v1 = vrot.slane %v331_v21, 1 }
 0x27f   :  { %v333_v22 = vadd.f32 %v332_v1, %v331_v21 }
 0x281   :  { %v334_v23 = vmul.f32 0.125, %v333_v22 }
 0x283   :  { %v335_v24 = vadd.f32 1e-05, %v334_v23 }
 0x285   :  { %635 = vrsqrt.f32 %v335_v24 }
 0x292   :  { %v636_v26 = vpop.eup %635 }
 0x293   :  { %v338_v27 = vmul.f32 %v636_v26, %v337_v25 }
 0x295   :  { %v342_v28 = vrot.slane %v338_v27, %v202_v51 }
 0x297   :  { %v343_v30 = vmul.f32 %v342_v28, %v326_v16 }
 0x299   :  { %v351_v31 = vadd.f32 %v501_v29, %v343_v30 }
 0x29b   :  { %v352_v32 = vmax.f32 %v351_v31, 0.0 }
 0x29d   :  { %v353_v33 = vpack.c.bf16 %v352_v32, %v352_v32 }
 0x29f   :  { %595 = vmatmul.mubr.bf16.vlgmr.msra.gmra.mxu0 %v353_v33 }
 0x35f   :  { %v459_v35 = vpop.f32.mrf.mxu0 }
 0x360   :  { %v460_v36 = vadd.f32 %v502_v34, %v459_v35 }
 0x361   :  { %v596_v37 = vpop.f32.mrf.mxu0 }
 0x362   :  { %637 = vtanh.f32 %v460_v36 }
 0x363   :  { %v462_v38 = vpop.f32.mrf.mxu0 }
 0x365   :  { %v597_v39 = vpop.f32.mrf.mxu0 }
 0x36f   :  { %v638_v40 = vpop.eup %637 }
 0x370   :  { %466 = vst [vmem:[#allocation7] sm:$0xff] %v638_v40 }
 0x371   :  { %690 = shalt.err (!%p687_p0)
}
 0x372   :  { %476 = dma.vmem_to_hbm [thread:$0]  %s474_s21, 128, %s854_s9, [#allocation4]  }
 0x373   :  { %703 = dma.done.wait [#allocation4], 128  }
 0x374   :  { %704 = vsyncadd [#allocation4], 4294967168 }
 0x375   :  { %480 = vsyncpa [#allocation3], 1 }
 0x376   :  { %481 = vsyncpa [#allocation6], 1 }
 0x377   :  { %482 = vsyncpa [#allocation4], 1 }

</bundles_post_ra>
